<compile_context>
chip_gen: v6e
topology: v6e:2x2x1
jax: 0.10.0
libtpu: 0.0.40
codegen_flags: <defaults>
</compile_context>

<pallas_src>
import jax
import jax.numpy as jnp
from jax import lax
from jax.experimental import pallas as pl
from jax.experimental.pallas import tpu as pltpu


# Large finite negative used for masked positions: exp underflows to exactly 0
# for any partially-masked row (same result as -inf), but fully-masked rows
# produce uniform weights instead of NaN.
_MASK_FILL = -1e30


def attention_kernel(tgt_ref, enc_ref, mask_ref, w_src_ref, w_h_ref, w_c_ref,
                     out_ref, attn_w_ref, vec_scratch):
    # Per grid step: one batch tile of Bt rows.
    tgt = tgt_ref[...]            # [Bt, Dout]
    enc = enc_ref[...]            # [Bt, S, Din]   (batch-major encoder block)
    mask = mask_ref[...]          # [Bt, 1, S]     (>0.5 means masked)

    # Reassociated Luong "general" score projection, fused in-kernel:
    #   tgt @ (enc @ W_src^T)^T  ==  (tgt @ W_src) @ enc^T
    q2 = jnp.dot(tgt, w_src_ref[...],
                 preferred_element_type=jnp.float32)               # [Bt, Din]

    # Memory-based relayout [Bt,Din] -> [Bt,1,Din] via the shared VMEM
    # scratch (indexed store + full reload) -- avoids a vector shape-cast.
    vec_scratch[:, 0, :] = q2
    q3 = vec_scratch[...]                                          # [Bt,1,Din]

    # scores[b,0,s] = sum_d q[b,0,d] * enc[b,s,d]   (batched, contracts Din)
    s = jnp.einsum('bqd,bkd->bqk', q3, enc,
                   preferred_element_type=jnp.float32)             # [Bt,1,S]
    s = jnp.where(mask > 0.5, _MASK_FILL, s)

    # numerically stable softmax over S
    m = jnp.max(s, axis=-1, keepdims=True)
    e = jnp.exp(s - m)
    denom = jnp.sum(e, axis=-1, keepdims=True)
    w = e / denom                                                  # [Bt,1,S]
    # (pl.reciprocal(denom, approx=True) would move the divide to the EUP
    #  slot at a small accuracy cost; exact division kept for 1e-4 agreement.)

    # attn_context[b,0,d] = sum_s w[b,0,s] * enc[b,s,d]
    ctx3 = jnp.einsum('bqk,bkd->bqd', w, enc,
                      preferred_element_type=jnp.float32)          # [Bt,1,Din]

    # Relayout [Bt,1,Din] -> [Bt,Din] through the same scratch buffer.
    vec_scratch[...] = ctx3
    ctx = vec_scratch[:, 0, :]                                     # [Bt, Din]

    # attn_out = tanh( tgt @ W_h^T + ctx @ W_c^T )
    # dot_general with transposed contraction dims -> no materialized .T
    h = lax.dot_general(tgt, w_h_ref[...],
                        dimension_numbers=(((1,), (1,)), ((), ())),
                        preferred_element_type=jnp.float32)        # [Bt, Dout]
    h = h + lax.dot_general(ctx, w_c_ref[...],
                            dimension_numbers=(((1,), (1,)), ((), ())),
                            preferred_element_type=jnp.float32)    # [Bt, Dout]

    out_ref[...] = jnp.tanh(h).astype(out_ref.dtype)
    attn_w_ref[...] = w.astype(attn_w_ref.dtype)


def _round_up(x, m):
    return ((x + m - 1) // m) * m


def attention_layer(tgt_input, encoder_out, src_mask, w_src, w_ctx, *,
                    block_b=None):
    """
    tgt_input:   [B, Dout] f32
    encoder_out: [S, B, Din] f32 (PyTorch time-major layout)
    src_mask:    [B, S] bool (True = masked) or float (1.0 = masked)
    w_src:       [Dout, Din]         (nn.Linear weight, y = x @ W^T)
    w_ctx:       [Dout, Dout + Din]  (nn.Linear weight over cat([tgt, ctx]))
    returns (attn_out [B, Dout], attn_weights [B, S])
    """
    B, Dout = tgt_input.shape
    S, Bk, Din = encoder_out.shape
    assert Bk == B

    # Split the combined projection: columns [0:Dout] multiply tgt_input,
    # columns [Dout:] multiply attn_context (matches torch.cat order).
    w_h = w_ctx[:, :Dout]                        # [Dout, Dout]
    w_c = w_ctx[:, Dout:]                        # [Dout, Din]

    # Batch-major view of the encoder for well-shaped batched einsums.
    # NOTE: BlockSpec cannot permute dims, so this one HBM pass over the
    # largest tensor is retained deliberately (the in-kernel time-major
    # alternative needs cross-lane relayouts).
    enc_bm = jnp.transpose(encoder_out, (1, 0, 2))   # [B, S, Din]

    mask_f = src_mask.astype(jnp.float32)            # [B, S], 1.0 = masked

    # Batch tile: at least 8 rows (sublane-aligned), capped at 128, and shrunk
    # until the (double-buffered) encoder block stays well inside VMEM.
    if block_b is None:
        block_b = min(128, _round_up(B, 8))
        while block_b > 8 and block_b * S * Din * 4 > 4 * 1024 * 1024:
            block_b //= 2
        block_b = max(8, _round_up(block_b, 8))

    Bp = _round_up(B, block_b)
    pad = Bp - B
    if pad:
        tgt_p = jnp.pad(tgt_input, ((0, pad), (0, 0)))
        enc_bm = jnp.pad(enc_bm, ((0, pad), (0, 0), (0, 0)))
        mask_f = jnp.pad(mask_f, ((0, pad), (0, 0)))   # pad rows are "valid" -> no NaN
    else:
        tgt_p = tgt_input

    mask3 = mask_f.reshape(Bp, 1, S)

    grid = (Bp // block_b,)

    grid_spec = pltpu.PrefetchScalarGridSpec(
        num_scalar_prefetch=0,
        grid=grid,
        in_specs=[
            pl.BlockSpec((block_b, Dout), lambda b: (b, 0)),        # tgt_input
            pl.BlockSpec((block_b, S, Din), lambda b: (b, 0, 0)),   # encoder (batch-major)
            pl.BlockSpec((block_b, 1, S), lambda b: (b, 0, 0)),     # mask
            pl.BlockSpec((Dout, Din), lambda b: (0, 0)),            # W_src
            pl.BlockSpec((Dout, Dout), lambda b: (0, 0)),           # W_ctx (tgt part)
            pl.BlockSpec((Dout, Din), lambda b: (0, 0)),            # W_ctx (ctx part)
        ],
        out_specs=[
            pl.BlockSpec((block_b, Dout), lambda b: (b, 0)),        # attn_out
            pl.BlockSpec((block_b, 1, S), lambda b: (b, 0, 0)),     # attn_weights
        ],
        scratch_shapes=[pltpu.VMEM((block_b, 1, Din), jnp.float32)],
    )

    attn_out_p, attn_w3 = pl.pallas_call(
        attention_kernel,
        out_shape=(
            jax.ShapeDtypeStruct((Bp, Dout), jnp.float32),
            jax.ShapeDtypeStruct((Bp, 1, S), jnp.float32),
        ),
        grid_spec=grid_spec,
        compiler_params=pltpu.CompilerParams(
            dimension_semantics=("parallel",)),
    )(tgt_p, enc_bm, mask3, w_src, w_h, w_c)

    attn_out = attn_out_p[:B]
    attn_weights = attn_w3.reshape(Bp, S)[:B]
    return attn_out, attn_weights


def reference(tgt_input, encoder_out, src_mask, w_src, w_ctx):
    """Pure-JAX mirror of the PyTorch AttentionLayer.forward."""
    enc = jnp.transpose(encoder_out, (1, 0, 2))                 # [B,S,Din]
    proj = jnp.einsum('bsd,od->bso', enc, w_src)                # [B,S,Dout]
    scores = jnp.einsum('bo,bso->bs', tgt_input, proj)          # [B,S]
    scores = jnp.where(src_mask, -jnp.inf, scores)
    w = jax.nn.softmax(scores, axis=-1)
    ctx = jnp.einsum('bs,bsd->bd', w, enc)                      # [B,Din]
    cph = jnp.concatenate([tgt_input, ctx], axis=1)
    out = jnp.tanh(cph @ w_ctx.T)
    return out, w


if __name__ == "__main__":
    B, S, Din, Dout = 4, 16, 32, 48

    key = jax.random.PRNGKey(0)
    k1, k2, k3, k4 = jax.random.split(key, 4)

    tgt_input = jax.random.normal(k1, (B, Dout), dtype=jnp.float32)
    encoder_out = jax.random.normal(k2, (S, B, Din), dtype=jnp.float32)

    # Varied valid lengths (no fully-masked rows); True = masked position.
    lengths = jnp.array([16, 12, 9, 5], dtype=jnp.int32)
    src_mask = jnp.arange(S, dtype=jnp.int32)[None, :] >= lengths[:, None]   # [B,S] bool

    # Deterministic "Linear" weights (no bias in the module).
    w_src = 0.1 * jax.random.normal(k3, (Dout, Din), dtype=jnp.float32)
    w_ctx = 0.1 * jax.random.normal(k4, (Dout, Dout + Din), dtype=jnp.float32)

    attn_out, attn_weights = attention_layer(tgt_input, encoder_out, src_mask,
                                             w_src, w_ctx)
    jax.block_until_ready((attn_out, attn_weights))

    ref_out, ref_w = reference(tgt_input, encoder_out, src_mask, w_src, w_ctx)
    assert attn_out.shape == (B, Dout) and attn_weights.shape == (B, S)
    assert jnp.allclose(attn_out, ref_out, atol=1e-4, rtol=1e-4)
    assert jnp.allclose(attn_weights, ref_w, atol=1e-4, rtol=1e-4)

    print("KERNEL_OK")
</pallas_src>

<mosaic_0001>
module attributes {stable_mosaic.version = 11 : i64} {
  func.func @attention_kernel(%arg0: i32, %arg1: memref<8x48xf32, #tpu.memory_space<vmem>>, %arg2: memref<8x16x32xf32, #tpu.memory_space<vmem>>, %arg3: memref<8x1x16xf32, #tpu.memory_space<vmem>>, %arg4: memref<48x32xf32, #tpu.memory_space<vmem>>, %arg5: memref<48x48xf32, #tpu.memory_space<vmem>>, %arg6: memref<48x32xf32, #tpu.memory_space<vmem>>, %arg7: memref<8x48xf32, #tpu.memory_space<vmem>>, %arg8: memref<8x1x16xf32, #tpu.memory_space<vmem>>, %arg9: memref<8x1x32xf32, #tpu.memory_space<vmem>>) attributes {dimension_semantics = [#tpu.dimension_semantics<parallel>], iteration_bounds = array<i64: 1>, scalar_prefetch = 0 : i64, scratch_operands = 1 : i64, tpu.core_type = #tpu.core_type<tc>, window_params = [{transform_indices = @transform_0, window_bounds = array<i64: 8, 48>}, {transform_indices = @transform_1, window_bounds = array<i64: 8, 16, 32>}, {transform_indices = @transform_2, window_bounds = array<i64: 8, 1, 16>}, {pipeline_mode = #tpu.pipeline_mode<synchronous>, transform_indices = @transform_3, window_bounds = array<i64: 48, 32>}, {pipeline_mode = #tpu.pipeline_mode<synchronous>, transform_indices = @transform_4, window_bounds = array<i64: 48, 48>}, {pipeline_mode = #tpu.pipeline_mode<synchronous>, transform_indices = @transform_5, window_bounds = array<i64: 48, 32>}, {transform_indices = @transform_6, window_bounds = array<i64: 8, 48>}, {transform_indices = @transform_7, window_bounds = array<i64: 8, 1, 16>}]} {
    %c0 = arith.constant 0 : index
    %c0_0 = arith.constant 0 : index
    %0 = vector.load %arg1[%c0, %c0_0] : memref<8x48xf32, #tpu.memory_space<vmem>>, vector<8x48xf32>
    %c0_1 = arith.constant 0 : index
    %c0_2 = arith.constant 0 : index
    %c0_3 = arith.constant 0 : index
    %1 = vector.load %arg2[%c0_1, %c0_2, %c0_3] : memref<8x16x32xf32, #tpu.memory_space<vmem>>, vector<8x16x32xf32>
    %c0_4 = arith.constant 0 : index
    %c0_5 = arith.constant 0 : index
    %c0_6 = arith.constant 0 : index
    %2 = vector.load %arg3[%c0_4, %c0_5, %c0_6] : memref<8x1x16xf32, #tpu.memory_space<vmem>>, vector<8x1x16xf32>
    %c0_7 = arith.constant 0 : index
    %c0_8 = arith.constant 0 : index
    %3 = vector.load %arg4[%c0_7, %c0_8] : memref<48x32xf32, #tpu.memory_space<vmem>>, vector<48x32xf32>
    %cst = arith.constant dense<0.000000e+00> : vector<8x32xf32>
    %4 = tpu.matmul %0, %3, %cst {dimension_numbers = #tpu.dot_dimension_numbers<[1], [0], [0], [1], [0, 0, 1, 1], [], []>} : vector<8x48xf32>, vector<48x32xf32>, vector<8x32xf32> -> vector<8x32xf32>
    %c0_9 = arith.constant 0 : index
    %c0_10 = arith.constant 0 : index
    %c0_11 = arith.constant 0 : index
    %5 = vector.load %arg9[%c0_9, %c0_10, %c0_11] : memref<8x1x32xf32, #tpu.memory_space<vmem>>, vector<8x1x32xf32>
    %6 = vector.shape_cast %5 : vector<8x1x32xf32> to vector<8x32xf32>
    %7 = vector.shape_cast %4 : vector<8x32xf32> to vector<8x1x32xf32>
    tpu.vector_store %arg9[%c0_9, %c0_10, %c0_11], %7 {strides = array<i32>} : memref<8x1x32xf32, #tpu.memory_space<vmem>>, vector<8x1x32xf32>,
    %c0_12 = arith.constant 0 : index
    %c0_13 = arith.constant 0 : index
    %c0_14 = arith.constant 0 : index
    %8 = vector.load %arg9[%c0_12, %c0_13, %c0_14] : memref<8x1x32xf32, #tpu.memory_space<vmem>>, vector<8x1x32xf32>
    "tpu.trace_start"() <{level = 10 : i32, message = "bqd,bkd->bqk"}> : () -> ()
    %cst_15 = arith.constant dense<0.000000e+00> : vector<8x1x16xf32>
    %9 = tpu.matmul %8, %1, %cst_15 {dimension_numbers = #tpu.dot_dimension_numbers<[2], [2], [1], [1], [0, 0, 0, 1, 1, 1], [0], [0]>} : vector<8x1x32xf32>, vector<8x16x32xf32>, vector<8x1x16xf32> -> vector<8x1x16xf32>
    %cst_16 = arith.constant 5.000000e-01 : f32
    "tpu.trace_stop"() : () -> ()
    %10 = vector.broadcast %cst_16 : f32 to vector<8x1x16xf32>
    %11 = arith.cmpf ogt, %2, %10 : vector<8x1x16xf32>
    %cst_17 = arith.constant -1.000000e+30 : f32
    %12 = vector.broadcast %cst_17 : f32 to vector<8x1x16xf32>
    %13 = arith.select %11, %12, %9 : vector<8x1x16xi1>, vector<8x1x16xf32>
    %cst_18 = arith.constant dense<0xFF800000> : vector<8x1xf32>
    %14 = vector.multi_reduction <maximumf>, %13, %cst_18 [2] : vector<8x1x16xf32> to vector<8x1xf32>
    %15 = vector.shape_cast %14 : vector<8x1xf32> to vector<8x1x1xf32>
    %16 = vector.broadcast %15 : vector<8x1x1xf32> to vector<8x1x16xf32>
    %17 = arith.subf %13, %16 : vector<8x1x16xf32>
    %18 = math.exp %17 : vector<8x1x16xf32>
    %cst_19 = arith.constant dense<0.000000e+00> : vector<8x1xf32>
    %19 = vector.multi_reduction <add>, %18, %cst_19 [2] : vector<8x1x16xf32> to vector<8x1xf32>
    %20 = vector.shape_cast %19 : vector<8x1xf32> to vector<8x1x1xf32>
    %21 = vector.broadcast %20 : vector<8x1x1xf32> to vector<8x1x16xf32>
    %22 = arith.divf %18, %21 : vector<8x1x16xf32>
    "tpu.trace_start"() <{level = 10 : i32, message = "bqk,bkd->bqd"}> : () -> ()
    %cst_20 = arith.constant dense<0.000000e+00> : vector<8x1x32xf32>
    %23 = tpu.matmul %22, %1, %cst_20 {dimension_numbers = #tpu.dot_dimension_numbers<[2], [1], [1], [2], [0, 0, 0, 1, 1, 2], [0], [0]>} : vector<8x1x16xf32>, vector<8x16x32xf32>, vector<8x1x32xf32> -> vector<8x1x32xf32>
    "tpu.trace_stop"() : () -> ()
    %c0_21 = arith.constant 0 : index
    %c0_22 = arith.constant 0 : index
    %c0_23 = arith.constant 0 : index
    %24 = vector.load %arg9[%c0_21, %c0_22, %c0_23] : memref<8x1x32xf32, #tpu.memory_space<vmem>>, vector<8x1x32xf32>
    tpu.vector_store %arg9[%c0_21, %c0_22, %c0_23], %23 {strides = array<i32>} : memref<8x1x32xf32, #tpu.memory_space<vmem>>, vector<8x1x32xf32>,
    %c0_24 = arith.constant 0 : index
    %c0_25 = arith.constant 0 : index
    %c0_26 = arith.constant 0 : index
    %25 = vector.load %arg9[%c0_24, %c0_25, %c0_26] : memref<8x1x32xf32, #tpu.memory_space<vmem>>, vector<8x1x32xf32>
    %26 = vector.shape_cast %25 : vector<8x1x32xf32> to vector<8x32xf32>
    %c0_27 = arith.constant 0 : index
    %c0_28 = arith.constant 0 : index
    %27 = vector.load %arg5[%c0_27, %c0_28] : memref<48x48xf32, #tpu.memory_space<vmem>>, vector<48x48xf32>
    %cst_29 = arith.constant dense<0.000000e+00> : vector<8x48xf32>
    %28 = tpu.matmul %0, %27, %cst_29 {dimension_numbers = #tpu.dot_dimension_numbers<[1], [1], [0], [0], [0, 0, 1, 0], [], []>} : vector<8x48xf32>, vector<48x48xf32>, vector<8x48xf32> -> vector<8x48xf32>
    %c0_30 = arith.constant 0 : index
    %c0_31 = arith.constant 0 : index
    %29 = vector.load %arg6[%c0_30, %c0_31] : memref<48x32xf32, #tpu.memory_space<vmem>>, vector<48x32xf32>
    %cst_32 = arith.constant dense<0.000000e+00> : vector<8x48xf32>
    %30 = tpu.matmul %26, %29, %cst_32 {dimension_numbers = #tpu.dot_dimension_numbers<[1], [1], [0], [0], [0, 0, 1, 0], [], []>} : vector<8x32xf32>, vector<48x32xf32>, vector<8x48xf32> -> vector<8x48xf32>
    %31 = arith.addf %28, %30 : vector<8x48xf32>
    %32 = math.tanh %31 : vector<8x48xf32>
    %c0_33 = arith.constant 0 : index
    %c0_34 = arith.constant 0 : index
    %33 = vector.load %arg7[%c0_33, %c0_34] : memref<8x48xf32, #tpu.memory_space<vmem>>, vector<8x48xf32>
    tpu.vector_store %arg7[%c0_33, %c0_34], %32 {strides = array<i32>} : memref<8x48xf32, #tpu.memory_space<vmem>>, vector<8x48xf32>,
    %c0_35 = arith.constant 0 : index
    %c0_36 = arith.constant 0 : index
    %c0_37 = arith.constant 0 : index
    %34 = vector.load %arg8[%c0_35, %c0_36, %c0_37] : memref<8x1x16xf32, #tpu.memory_space<vmem>>, vector<8x1x16xf32>
    tpu.vector_store %arg8[%c0_35, %c0_36, %c0_37], %22 {strides = array<i32>} : memref<8x1x16xf32, #tpu.memory_space<vmem>>, vector<8x1x16xf32>,
    return
  }
  func.func @transform_0(%arg0: i32) -> (i32, i32) {
    %c0_i32 = arith.constant 0 : i32
    %c0_i32_0 = arith.constant 0 : i32
    return %arg0, %c0_i32 : i32, i32
  }
  func.func @transform_1(%arg0: i32) -> (i32, i32, i32) {
    %c0_i32 = arith.constant 0 : i32
    %c0_i32_0 = arith.constant 0 : i32
    %c0_i32_1 = arith.constant 0 : i32
    return %arg0, %c0_i32, %c0_i32_0 : i32, i32, i32
  }
  func.func @transform_2(%arg0: i32) -> (i32, i32, i32) {
    %c0_i32 = arith.constant 0 : i32
    %c0_i32_0 = arith.constant 0 : i32
    %c0_i32_1 = arith.constant 0 : i32
    return %arg0, %c0_i32, %c0_i32_0 : i32, i32, i32
  }
  func.func @transform_3(%arg0: i32) -> (i32, i32) {
    %c0_i32 = arith.constant 0 : i32
    %c0_i32_0 = arith.constant 0 : i32
    %c0_i32_1 = arith.constant 0 : i32
    return %c0_i32, %c0_i32_0 : i32, i32
  }
  func.func @transform_4(%arg0: i32) -> (i32, i32) {
    %c0_i32 = arith.constant 0 : i32
    %c0_i32_0 = arith.constant 0 : i32
    %c0_i32_1 = arith.constant 0 : i32
    return %c0_i32, %c0_i32_0 : i32, i32
  }
  func.func @transform_5(%arg0: i32) -> (i32, i32) {
    %c0_i32 = arith.constant 0 : i32
    %c0_i32_0 = arith.constant 0 : i32
    %c0_i32_1 = arith.constant 0 : i32
    return %c0_i32, %c0_i32_0 : i32, i32
  }
  func.func @transform_6(%arg0: i32) -> (i32, i32) {
    %c0_i32 = arith.constant 0 : i32
    %c0_i32_0 = arith.constant 0 : i32
    return %arg0, %c0_i32 : i32, i32
  }
  func.func @transform_7(%arg0: i32) -> (i32, i32, i32) {
    %c0_i32 = arith.constant 0 : i32
    %c0_i32_0 = arith.constant 0 : i32
    %c0_i32_1 = arith.constant 0 : i32
    return %arg0, %c0_i32, %c0_i32_0 : i32, i32, i32
  }
}

</mosaic_0001>

<bundles_post_ra>
// kernel: tpu_custom_call.1
= control target key start
LH: loop header
LB: loop body
LE: loop exit
PB: predicated region body
PF: predicated region fallthrough
CT: control target
= control target key end

     0   :  { %13 = vsyncpa [#allocation4], 0  ;;  %s2732_s0 = inlined_call_operand.hbm [shape: f32[8,48], index: 0, kind: input, shape index: {}]   ;;  %s2733_s1 = inlined_call_operand.vmem [shape: f32[8,16,32], index: 1, kind: input, shape index: {}]   ;;  %s2734_s2 = inlined_call_operand.hbm [shape: f32[8,1,16], index: 2, kind: input, shape index: {}]   ;;  %s2735_s3 = inlined_call_operand.vmem [shape: f32[48,32], index: 3, kind: input, shape index: {}]   ;;  %s2736_s4 = inlined_call_operand.hbm [shape: f32[48,48], index: 4, kind: input, shape index: {}]   ;;  %s2737_s5 = inlined_call_operand.vmem [shape: f32[48,32], index: 5, kind: input, shape index: {}]   ;;  %s2738_s6 = inlined_call_operand.hbm [shape: f32[8,48], index: 6, kind: output, shape index: {0}]   ;;  %s2739_s7 = inlined_call_operand.hbm [shape: f32[8,1,16], index: 7, kind: output, shape index: {1}]  }
   0x1   :  { %14 = vsyncpa [#allocation7], 0 }
   0x2   :  { %15 = vsyncpa [#allocation5], 0 }
   0x3   :  { %16 = vsyncpa [#allocation11], 0  ;;  %s2301_s24 = smov [#allocation6]  }
   0x4   :  { %s34_s25 = sshll.u32 %s2301_s24, 4  ;;  %s35_s25 = int_to_ptr.vmem [resolvable:$true] %s34_s25 }
   0x5   :  { %s2201_s26 = scalar_lea.vmem %s35_s25, 128  ;;  %p2206_p1 = scmp.lt.s32.totalorder %s35_s25, %s35_s25 }
   0x6   :  { %p2202_p0 = scmp.ne.s32.totalorder %s35_s25, %s2201_s26  ;;  %p2207_p2 = scmp.lt.s32.totalorder %s2201_s26, %s2201_s26 }
   0x8   :  { %p2208_p3 = por %p2207_p2, %p2206_p1 }
   0xa   :  { %p2209_p4 = pnand %p2208_p3, %p2202_p0 }
   0xc   :  { %2212 = shalt.err (!%p2209_p4)
}
   0xd   :  { %s2302_s27 = smov 16   ;;  %s2303_s28 = smov 1  }
   0xe   :  { %40 = dma.hbm_to_vmem [thread:$0]  %s2734_s2, 128, %s35_s25, [#allocation7], %s2302_s27, %s2302_s27, %s2303_s28  }
   0xf   :  { %s2304_s8 = smov [#allocation3]   ;;  %s2305_s10 = smov [#allocation8]  }
  0x10   :  { %s23_s9 = sshll.u32 %s2304_s8, 4  ;;  %s48_s11 = sshll.u32 %s2305_s10, 4  ;;  %s24_s9 = int_to_ptr.vmem [resolvable:$true] %s23_s9  ;;  %s49_s11 = int_to_ptr.vmem [resolvable:$true] %s48_s11 }
  0x11   :  { %s2221_s12 = scalar_lea.vmem %s24_s9, 128  ;;  %p2226_p6 = scmp.lt.s32.totalorder %s24_s9, %s24_s9 }
  0x12   :  { %p2222_p5 = scmp.ne.s32.totalorder %s24_s9, %s2221_s12  ;;  %p2227_p7 = scmp.lt.s32.totalorder %s2221_s12, %s2221_s12 }
  0x14   :  { %p2228_p8 = por %p2227_p7, %p2226_p6 }
  0x16   :  { %p2229_p9 = pnand %p2228_p8, %p2222_p5 }
  0x18   :  { %2232 = shalt.err (!%p2229_p9)
}
  0x19   :  { %26 = dma.hbm_to_vmem [thread:$0]  %s2732_s0, 128, %s24_s9, [#allocation4]  }
  0x1a   :  { %s2241_s15 = scalar_lea.vmem %s49_s11, 768  ;;  %p2246_p11 = scmp.lt.s32.totalorder %s49_s11, %s49_s11 }
  0x1b   :  { %p2242_p10 = scmp.ne.s32.totalorder %s49_s11, %s2241_s15  ;;  %p2247_p12 = scmp.lt.s32.totalorder %s2241_s15, %s2241_s15 }
  0x1d   :  { %p2248_p13 = por %p2247_p12, %p2246_p11 }
  0x1f   :  { %p2249_p0 = pnand %p2248_p13, %p2242_p10 }
  0x21   :  { %2252 = shalt.err (!%p2249_p0)
}
  0x22   :  { %s2306_s2 = smov 128   ;;  %s2307_s16 = smov 8  }
  0x23   :  { %54 = dma.hbm_to_vmem [thread:$0]  %s2736_s4, 768, %s49_s11, [#allocation7], %s2306_s2, %s2306_s2, %s2307_s16  }
  0x24   :  { %2293 = dma.done.wait [#allocation4], 128  }
  0x25   :  { %2294 = vsyncadd [#allocation4], 4294967168 }
  0x26   :  { %2295 = dma.done.wait [#allocation7], 896  }
  0x27   :  { %2296 = vsyncadd [#allocation7], 4294966400  ;;  %v2308_v0 = vmov 0.0   ;;  %vm2309_vm0 = vmmov 0   ;;  %v96_v1 = vld [vmem:[%s2735_s3 + $0x28] sm:$0xff]  ;;  %v95_v2 = vld [vmem:[%s2735_s3 + $0x20] sm:$0xff]  ;;  %v176_v14 = vlaneseq }
  0x28   :  { %1990 = vmatprep.subr.mxu0 %v2308_v0  ;;  %2002 = vmatprep.mubr.msk.f32.mxu0 %vm2309_vm0, %v2308_v0  ;;  %v94_v3 = vld [vmem:[%s2735_s3 + $0x18] sm:$0xff]  ;;  %v93_v4 = vld [vmem:[%s2735_s3 + $0x10] sm:$0xff]  ;;  %v92_v5 = vld [vmem:[%s2735_s3 + $0x8] sm:$0xff]  ;;  %vm97_vm1 = vcmask 392192   ;;  %vm246_vm2 = vcmask 261120   ;;  %vm229_vm3 = vcmask 253952  }
  0x29   :  { %2005 = vmatprep.subr.mxu1 %v2308_v0  ;;  %2009 = vmatprep.mubr.msk.f32.mxu1 %vm2309_vm0, %v2308_v0  ;;  %v91_v6 = vld [vmem:[%s2735_s3] sm:$0xff]  ;;  %v2393_v7 = vld [vmem:[#allocation3] sm:$0xff]  ;;  %v2310_v12 = vmov 1966171168   ;;  %v177_v16 = vshrl.u32 %v176_v14, 7  ;;  %v2452_v33 = vld [vmem:[%s2733_s1 + $0x18] sm:$0xff] }
  0x2a   :  { %1991 = vmatpush3.msra.mxu0 %v96_v1  ;;  %v2404_v8 = vld [vmem:[%s2733_s1 + $0x8] sm:$0xff]  ;;  %v2419_v10 = vld [vmem:[%s2733_s1] sm:$0xff]  ;;  %v174_v13 = vunpack.c.l.s4 %v2310_v12  ;;  %v2469_v37 = vld [vmem:[%s2733_s1 + $0x10] sm:$0xff]  ;;  %vm895_vm5 = vcmask 122880   ;;  %vm984_vm13 = vcmask 130048  }
  0x2b   :  { %1992 = vmatprep.subr.mxu0 %v2308_v0  ;;  %2006 = vmatpush3.xpose.msk.msra.mxu1 %vm246_vm2, %v2404_v8  ;;  %v2411_v9 = vld [vmem:[%s2733_s1 + $0x28] sm:$0xff]  ;;  %v2427_v11 = vld [vmem:[%s2733_s1 + $0x20] sm:$0xff]  ;;  %v2487_v39 = vld [vmem:[%s2733_s1 + $0x38] sm:$0xff] }
  0x2c   :  { %1993 = vmatpush3.msra.mxu0 %v95_v2  ;;  %2007 = vmatprep.subr.mxu1 %v2308_v0  ;;  %v175_v15 = vunpack.c.0.s8 %v174_v13  ;;  %v2458_v35 = vld [vmem:[%s2733_s1 + $0x48] sm:$0xff]  ;;  %v2479_v38 = vld [vmem:[%s2733_s1 + $0x40] sm:$0xff]  ;;  %v2507_v43 = vld [vmem:[%s2733_s1 + $0x30] sm:$0xff] }
  0x2d   :  { %1994 = vmatprep.subr.mxu0 %v2308_v0  ;;  %v2496_v41 = vld [vmem:[%s2733_s1 + $0x68] sm:$0xff]  ;;  %v2517_v44 = vld [vmem:[%s2733_s1 + $0x60] sm:$0xff]  ;;  %v2525_v45 = vld [vmem:[%s2733_s1 + $0x58] sm:$0xff] }
  0x2e   :  { %1995 = vmatpush3.msra.mxu0 %v94_v3  ;;  %v2433_v17 = vsub.s32 %v175_v15, %v177_v16  ;;  %v2540_v48 = vld [vmem:[%s2733_s1 + $0x50] sm:$0xff]  ;;  %v2553_v49 = vld [vmem:[%s2733_s1 + $0x78] sm:$0xff] }
  0x2f   :  { %1996 = vmatprep.subr.mxu0 %v2308_v0  ;;  %2008 = vmatpush3.xpose.msk.msra.mxu1 %vm246_vm2, %v2419_v10  ;;  %v2565_v51 = vld [vmem:[%s2733_s1 + $0x70] sm:$0xff] }
  0x30   :  { %1997 = vmatpush3.msra.mxu0 %v93_v4  ;;  %2012 = vmatprep.subr.mxu1 %v2308_v0  ;;  %v83_v53 = vld [vmem:[#allocation6] sm:$0x1]  ;;  %v85_v54 = vld [vmem:[#allocation6 + $0x2] sm:$0x1]  ;;  %v84_v61 = vld [vmem:[#allocation6 + $0x1] sm:$0x1] }
  0x31   :  { %1998 = vmatprep.subr.mxu0 %v2308_v0  ;;  %vm879_vm4 = vcmp.gt.f32.partialorder %v83_v53, 0.5  ;;  %vm881_vm6 = vcmp.gt.f32.partialorder %v85_v54, 0.5  ;;  %v87_v1 = vld [vmem:[#allocation6 + $0x4] sm:$0x1]  ;;  %vm880_vm7 = vcmp.gt.f32.partialorder %v84_v61, 0.5 }
  0x32   :  { %1999 = vmatpush3.msra.mxu0 %v92_v5  ;;  %vm883_vm8 = vcmp.gt.f32.partialorder %v87_v1, 0.5 }
  0x33   :  { %2000 = vmatprep.subr.mxu0 %v2308_v0 }
  0x34   :  { %2001 = vmatpush3.msra.mxu0 %v91_v6 }
  0x35   :  { %2003 = vmatmul.mubr.msk.f32.vlgmr.msra.gmra.mxu0 %vm97_vm1, %v2393_v7  ;;  %2019 = vmatprep.subr.mxu0 %v2308_v0 }
  0x36   :  { %2023 = vmatprep.mubr.msk.f32.mxu0 %vm2309_vm0, %v2308_v0  ;;  %2020 = vmatpush3.xpose.msk.msra.mxu0 %vm246_vm2, %v2411_v9 }
  0x37   :  { %2021 = vmatprep.subr.mxu0 %v2308_v0 }
  0x3a   :  { %2022 = vmatpush3.xpose.msk.msra.mxu0 %vm246_vm2, %v2427_v11 }
  0x3b   :  { %2033 = vmatprep.subr.mxu0 %v2308_v0 }
  0xf5   :  { %v167_v18 = vpop.f32.mrf.mxu0 }
  0xf6   :  { %v172_v19 = vcombine.high %v167_v18, %v167_v18  ;;  %v179_v20 = vrot.slane %v167_v18, %v2433_v17 }
  0xf7   :  { %v2004_v21 = vpop.f32.mrf.mxu0 }
  0xf8   :  { %v186_v22 = vrot.slane %v172_v19, %v2433_v17  ;;  %v187_v23 = vcombine.high %v179_v20, %v179_v20  ;;  %v195_v24 = vrot.slane %v179_v20, %v2433_v17  ;;  %v88_v20 = vld [vmem:[#allocation6 + $0x5] sm:$0x1] }
  0xf9   :  { %vm884_vm11 = vcmp.gt.f32.partialorder %v88_v20, 0.5 }
  0xfa   :  { %v188_v25 = vcombine.high %v186_v22, %v186_v22  ;;  %v202_v26 = vrot.slane %v186_v22, %v2433_v17  ;;  %v209_v27 = vrot.slane %v187_v23, %v2433_v17  ;;  %v217_v28 = vcombine.high %v195_v24, %v195_v24  ;;  %230 = vst.msk [vmem:[#allocation2] sm:$0x1] %vm229_vm3, %v195_v24 }
  0xfc   :  { %v216_v29 = vrot.slane %v188_v25, %v2433_v17  ;;  %v218_v30 = vcombine.high %v202_v26, %v202_v26  ;;  %v219_v31 = vcombine.high %v209_v27, %v209_v27  ;;  %231 = vst.msk [vmem:[#allocation2 + $0x1] sm:$0x1] %vm229_vm3, %v209_v27  ;;  %232 = vst.msk [vmem:[#allocation2 + $0x2] sm:$0x1] %vm229_vm3, %v217_v28  ;;  %v90_v27 = vld [vmem:[#allocation6 + $0x7] sm:$0x1] }
  0xfd   :  { %234 = vst.msk [vmem:[#allocation2 + $0x4] sm:$0x1] %vm229_vm3, %v202_v26  ;;  %vm886_vm12 = vcmp.gt.f32.partialorder %v90_v27, 0.5 }
  0xfe   :  { %v220_v32 = vcombine.high %v216_v29, %v216_v29  ;;  %233 = vst.msk [vmem:[#allocation2 + $0x3] sm:$0x1] %vm229_vm3, %v219_v31  ;;  %235 = vst.msk [vmem:[#allocation2 + $0x5] sm:$0x1] %vm229_vm3, %v216_v29 }
  0xff   :  { %236 = vst.msk [vmem:[#allocation2 + $0x6] sm:$0x1] %vm229_vm3, %v218_v30 }
 0x100   :  { %237 = vst.msk [vmem:[#allocation2 + $0x7] sm:$0x1] %vm229_vm3, %v220_v32 }
 0x101   :  { %v238_v34 = vld [vmem:[#allocation2] sm:$0x1] }
 0x102   :  { %2010 = vmatmul.mubr.msk.f32.vlgmr.msra.gmra.mxu1 %vm246_vm2, %v238_v34 }
 0x103   :  { %2013 = vmatpush3.xpose.msk.msra.mxu1 %vm246_vm2, %v2452_v33  ;;  %v240_v36 = vld [vmem:[#allocation2 + $0x2] sm:$0x1]  ;;  %2016 = vmatprep.mubr.msk.f32.mxu1 %vm2309_vm0, %v2308_v0  ;;  %v239_v40 = vld [vmem:[#allocation2 + $0x1] sm:$0x1] }
 0x104   :  { %2024 = vmatmul.mubr.msk.f32.vlgmr.msra.gmra.mxu0 %vm246_vm2, %v240_v36  ;;  %2014 = vmatprep.subr.mxu1 %v2308_v0  ;;  %v242_v42 = vld [vmem:[#allocation2 + $0x4] sm:$0x1] }
 0x105   :  { %2034 = vmatpush3.xpose.msk.msra.mxu0 %vm246_vm2, %v2458_v35  ;;  %2037 = vmatprep.mubr.msk.f32.mxu0 %vm2309_vm0, %v2308_v0  ;;  %v241_v46 = vld [vmem:[#allocation2 + $0x3] sm:$0x1]  ;;  %v243_v50 = vld [vmem:[#allocation2 + $0x5] sm:$0x1] }
 0x106   :  { %2035 = vmatprep.subr.mxu0 %v2308_v0  ;;  %v244_v47 = vld [vmem:[#allocation2 + $0x6] sm:$0x1] }
 0x107   :  { %2015 = vmatpush3.xpose.msk.msra.mxu1 %vm246_vm2, %v2469_v37  ;;  %v245_v52 = vld [vmem:[#allocation2 + $0x7] sm:$0x1] }
 0x108   :  { %2026 = vmatprep.subr.mxu1 %v2308_v0 }
 0x109   :  { %2036 = vmatpush3.xpose.msk.msra.mxu0 %vm246_vm2, %v2479_v38 }
 0x10a   :  { %2017 = vmatmul.mubr.msk.f32.vlgmr.msra.gmra.mxu1 %vm246_vm2, %v239_v40  ;;  %2047 = vmatprep.subr.mxu0 %v2308_v0 }
 0x10b   :  { %2027 = vmatpush3.xpose.msk.msra.mxu1 %vm246_vm2, %v2487_v39  ;;  %2030 = vmatprep.mubr.msk.f32.mxu1 %vm2309_vm0, %v2308_v0 }
 0x10c   :  { %2038 = vmatmul.mubr.msk.f32.vlgmr.msra.gmra.mxu0 %vm246_vm2, %v242_v42  ;;  %2028 = vmatprep.subr.mxu1 %v2308_v0 }
 0x10d   :  { %2048 = vmatpush3.xpose.msk.msra.mxu0 %vm246_vm2, %v2496_v41  ;;  %2051 = vmatprep.mubr.msk.f32.mxu0 %vm2309_vm0, %v2308_v0 }
 0x10e   :  { %2049 = vmatprep.subr.mxu0 %v2308_v0 }
 0x10f   :  { %2029 = vmatpush3.xpose.msk.msra.mxu1 %vm246_vm2, %v2507_v43 }
 0x110   :  { %2040 = vmatprep.subr.mxu1 %v2308_v0 }
 0x111   :  { %2050 = vmatpush3.xpose.msk.msra.mxu0 %vm246_vm2, %v2517_v44 }
 0x112   :  { %2031 = vmatmul.mubr.msk.f32.vlgmr.msra.gmra.mxu1 %vm246_vm2, %v241_v46  ;;  %2061 = vmatprep.subr.mxu0 %v2308_v0 }
 0x113   :  { %2041 = vmatpush3.xpose.msk.msra.mxu1 %vm246_vm2, %v2525_v45  ;;  %2044 = vmatprep.mubr.msk.f32.mxu1 %vm2309_vm0, %v2308_v0 }
 0x114   :  { %2052 = vmatmul.mubr.msk.f32.vlgmr.msra.gmra.mxu0 %vm246_vm2, %v244_v47  ;;  %2042 = vmatprep.subr.mxu1 %v2308_v0 }
 0x115   :  { %2062 = vmatpush3.msra.mxu0 %v2404_v8  ;;  %2065 = vmatprep.mubr.msk.f32.mxu0 %vm2309_vm0, %v2308_v0 }
 0x116   :  { %2063 = vmatprep.subr.mxu0 %v2308_v0 }
 0x117   :  { %2043 = vmatpush3.xpose.msk.msra.mxu1 %vm246_vm2, %v2540_v48  ;;  %2064 = vmatpush3.msra.mxu0 %v2419_v10 }
 0x118   :  { %2054 = vmatprep.subr.mxu1 %v2308_v0  ;;  %2068 = vmatprep.subr.mxu0 %v2308_v0 }
 0x11a   :  { %2045 = vmatmul.mubr.msk.f32.vlgmr.msra.gmra.mxu1 %vm246_vm2, %v243_v50 }
 0x11b   :  { %2055 = vmatpush3.xpose.msk.msra.mxu1 %vm246_vm2, %v2553_v49  ;;  %2058 = vmatprep.mubr.msk.f32.mxu1 %vm2309_vm0, %v2308_v0 }
 0x11c   :  { %2056 = vmatprep.subr.mxu1 %v2308_v0 }
 0x11f   :  { %2057 = vmatpush3.xpose.msk.msra.mxu1 %vm246_vm2, %v2565_v51 }
 0x120   :  { %2075 = vmatprep.subr.mxu1 %v2308_v0 }
 0x122   :  { %2059 = vmatmul.mubr.msk.f32.vlgmr.msra.gmra.mxu1 %vm246_vm2, %v245_v52 }
 0x123   :  { %2076 = vmatpush3.msra.mxu1 %v2411_v9  ;;  %2079 = vmatprep.mubr.msk.f32.mxu1 %vm2309_vm0, %v2308_v0  ;;  %v86_v9 = vld [vmem:[#allocation6 + $0x3] sm:$0x1] }
 0x124   :  { %2077 = vmatprep.subr.mxu1 %v2308_v0  ;;  %vm882_vm9 = vcmp.gt.f32.partialorder %v86_v9, 0.5 }
 0x125   :  { %2078 = vmatpush3.msra.mxu1 %v2427_v11  ;;  %v89_v11 = vld [vmem:[#allocation6 + $0x6] sm:$0x1] }
 0x126   :  { %2089 = vmatprep.subr.mxu1 %v2308_v0  ;;  %vm885_vm10 = vcmp.gt.f32.partialorder %v89_v11, 0.5 }
 0x1c2   :  { %v322_v55 = vpop.f32.mrf.mxu1 }
 0x1c3   :  { %v887_v56 = vsel %vm879_vm4, -1e+30, %v322_v55 }
 0x1c4   :  { %v2011_v57 = vpop.f32.mrf.mxu1  ;;  %v480_v58 = vpop.f32.mrf.mxu0  ;;  %v896_v59 = vsel %vm895_vm5, %v887_v56, -inf }
 0x1c5   :  { %v889_v60 = vsel %vm881_vm6, -1e+30, %v480_v58  ;;  %897 = vmax.xlane.f32.xlu0 %v896_v59 }
 0x1c6   :  { %v2025_v62 = vpop.f32.mrf.mxu0  ;;  %v902_v63 = vsel %vm895_vm5, %v889_v60, -inf }
 0x1c7   :  { %903 = vmax.xlane.f32.xlu1 %v902_v63 }
 0x1ca   :  { %v401_v2 = vpop.f32.mrf.mxu1 }
 0x1cb   :  { %v888_v3 = vsel %vm880_vm7, -1e+30, %v401_v2 }
 0x1cc   :  { %v2018_v4 = vpop.f32.mrf.mxu1  ;;  %v638_v5 = vpop.f32.mrf.mxu0  ;;  %v899_v6 = vsel %vm895_vm5, %v888_v3, -inf }
 0x1cd   :  { %v891_v8 = vsel %vm883_vm8, -1e+30, %v638_v5  ;;  %900 = vmax.xlane.f32.xlu0 %v899_v6 }
 0x1ce   :  { %v2039_v10 = vpop.f32.mrf.mxu0  ;;  %v908_v12 = vsel %vm895_vm5, %v891_v8, -inf }
 0x1d1   :  { %909 = vmax.xlane.f32.xlu0 %v908_v12 }
 0x1d2   :  { %v559_v13 = vpop.f32.mrf.mxu1 }
 0x1d3   :  { %v890_v14 = vsel %vm882_vm9, -1e+30, %v559_v13 }
 0x1d4   :  { %v2032_v15 = vpop.f32.mrf.mxu1  ;;  %v796_v16 = vpop.f32.mrf.mxu0  ;;  %v905_v18 = vsel %vm895_vm5, %v890_v14, -inf }
 0x1d5   :  { %v893_v19 = vsel %vm885_vm10, -1e+30, %v796_v16  ;;  %906 = vmax.xlane.f32.xlu1 %v905_v18 }
 0x1d6   :  { %v2053_v21 = vpop.f32.mrf.mxu0  ;;  %v914_v22 = vsel %vm895_vm5, %v893_v19, -inf }
 0x1d7   :  { %915 = vmax.xlane.f32.xlu0 %v914_v22 }
 0x1da   :  { %v717_v23 = vpop.f32.mrf.mxu1 }
 0x1db   :  { %v892_v24 = vsel %vm884_vm11, -1e+30, %v717_v23 }
 0x1dc   :  { %v2046_v25 = vpop.f32.mrf.mxu1  ;;  %v911_v26 = vsel %vm895_vm5, %v892_v24, -inf }
 0x1dd   :  { %912 = vmax.xlane.f32.xlu1 %v911_v26 }
 0x1e2   :  { %v875_v28 = vpop.f32.mrf.mxu1 }
 0x1e3   :  { %v894_v29 = vsel %vm886_vm12, -1e+30, %v875_v28 }
 0x1e4   :  { %v2060_v30 = vpop.f32.mrf.mxu1  ;;  %v917_v31 = vsel %vm895_vm5, %v894_v29, -inf }
 0x1e5   :  { %918 = vmax.xlane.f32.xlu1 %v917_v31 }
 0x24e   :  { %v898_v32 = vpop.xlane.xlu0 %897 }
 0x24f   :  { %v920_v34 = vsub.f32 %v887_v56, %v898_v32 }
 0x250   :  { %v904_v36 = vpop.xlane.xlu1 %903 }
 0x251   :  { %v928_v40 = vmul.f32 1.442695, %v920_v34  ;;  %v922_v42 = vsub.f32 %v889_v60, %v904_v36 }
 0x253   :  { %2159 = vpow2.f32 %v928_v40  ;;  %v932_v46 = vmul.f32 1.442695, %v922_v42 }
 0x255   :  { %2161 = vpow2.f32 %v932_v46  ;;  %v1596_v46 = vld [vmem:[%s2737_s5 + $0x28] sm:$0xff] }
 0x256   :  { %v901_v47 = vpop.xlane.xlu0 %900 }
 0x257   :  { %v921_v50 = vsub.f32 %v888_v3, %v901_v47  ;;  %v1595_v47 = vld [vmem:[%s2737_s5 + $0x20] sm:$0xff] }
 0x259   :  { %v930_v52 = vmul.f32 1.442695, %v921_v50  ;;  %v1588_v50 = vld [vmem:[#allocation8 + $0x18] sm:$0xff] }
 0x25a   :  { %v910_v53 = vpop.xlane.xlu0 %909 }
 0x25b   :  { %2163 = vpow2.f32 %v930_v52  ;;  %v924_v54 = vsub.f32 %v891_v8, %v910_v53  ;;  %v1594_v52 = vld [vmem:[%s2737_s5 + $0x18] sm:$0xff]  ;;  %v1587_v53 = vld [vmem:[#allocation8 + $0x10] sm:$0xff] }
 0x25d   :  { %v936_v55 = vmul.f32 1.442695, %v924_v54  ;;  %v1593_v54 = vld [vmem:[%s2737_s5 + $0x10] sm:$0xff] }
 0x25e   :  { %v907_v57 = vpop.xlane.xlu1 %906 }
 0x25f   :  { %2165 = vpow2.f32 %v936_v55  ;;  %v923_v58 = vsub.f32 %v890_v14, %v907_v57  ;;  %v1586_v55 = vld [vmem:[#allocation8 + $0x8] sm:$0xff]  ;;  %v1592_v57 = vld [vmem:[%s2737_s5 + $0x8] sm:$0xff] }
 0x260   :  { %v2160_v59 = vpop.eup %2159  ;;  %v916_v61 = vpop.xlane.xlu0 %915 }
 0x261   :  { %v934_v62 = vmul.f32 1.442695, %v923_v58  ;;  %v926_v56 = vsub.f32 %v893_v19, %v916_v61  ;;  %v944_v63 = vsel %vm895_vm5, %v2160_v59, 0.0  ;;  %v1585_v58 = vld [vmem:[#allocation8] sm:$0xff] }
 0x262   :  { %v2162_v60 = vpop.eup %2161  ;;  %945 = vadd.xlane.f32.xlu0 %v944_v63 }
 0x263   :  { %2167 = vpow2.f32 %v934_v62  ;;  %v940_v1 = vmul.f32 1.442695, %v926_v56  ;;  %v950_v2 = vsel %vm895_vm5, %v2162_v60, 0.0 }
 0x265   :  { %2169 = vpow2.f32 %v940_v1 }
 0x266   :  { %v913_v3 = vpop.xlane.xlu1 %912  ;;  %951 = vadd.xlane.f32.xlu0 %v950_v2 }
 0x267   :  { %v925_v4 = vsub.f32 %v892_v24, %v913_v3 }
 0x268   :  { %v2164_v5 = vpop.eup %2163 }
 0x269   :  { %v938_v6 = vmul.f32 1.442695, %v925_v4  ;;  %v947_v8 = vsel %vm895_vm5, %v2164_v5, 0.0 }
 0x26a   :  { %948 = vadd.xlane.f32.xlu1 %v947_v8 }
 0x26b   :  { %2171 = vpow2.f32 %v938_v6 }
 0x26c   :  { %v2166_v9 = vpop.eup %2165 }
 0x26d   :  { %v956_v10 = vsel %vm895_vm5, %v2166_v9, 0.0 }
 0x26e   :  { %v919_v11 = vpop.xlane.xlu1 %918  ;;  %957 = vadd.xlane.f32.xlu0 %v956_v10 }
 0x26f   :  { %v927_v12 = vsub.f32 %v894_v29, %v919_v11 }
 0x270   :  { %v2589_v13 = vpop.eup %2167 }
 0x271   :  { %v942_v14 = vmul.f32 1.442695, %v927_v12  ;;  %v953_v15 = vsel %vm895_vm5, %v2589_v13, 0.0 }
 0x272   :  { %v2593_v16 = vpop.eup %2169  ;;  %954 = vadd.xlane.f32.xlu1 %v953_v15 }
 0x273   :  { %2173 = vpow2.f32 %v942_v14  ;;  %v962_v18 = vsel %vm895_vm5, %v2593_v16, 0.0 }
 0x274   :  { %963 = vadd.xlane.f32.xlu0 %v962_v18 }
 0x278   :  { %v2597_v19 = vpop.eup %2171 }
 0x279   :  { %v959_v20 = vsel %vm895_vm5, %v2597_v19, 0.0 }
 0x27a   :  { %960 = vadd.xlane.f32.xlu1 %v959_v20 }
 0x280   :  { %v2601_v21 = vpop.eup %2173 }
 0x281   :  { %v965_v22 = vsel %vm895_vm5, %v2601_v21, 0.0 }
 0x282   :  { %966 = vadd.xlane.f32.xlu1 %v965_v22 }
 0x2eb   :  { %v946_v23 = vpop.xlane.xlu0 %945 }
 0x2ec   :  { %2175 = vrcp.f32 %v946_v23 }
 0x2ef   :  { %v952_v24 = vpop.xlane.xlu0 %951 }
 0x2f0   :  { %2177 = vrcp.f32 %v952_v24 }
 0x2f3   :  { %v949_v25 = vpop.xlane.xlu1 %948 }
 0x2f4   :  { %2179 = vrcp.f32 %v949_v25 }
 0x2f7   :  { %v958_v26 = vpop.xlane.xlu0 %957 }
 0x2f8   :  { %2181 = vrcp.f32 %v958_v26 }
 0x2f9   :  { %v2176_v27 = vpop.eup %2175 }
 0x2fa   :  { %v969_v28 = vmul.f32 %v2176_v27, %v2160_v59  ;;  %v1591_v59 = vld [vmem:[%s2737_s5] sm:$0xff]  ;;  %s2311_s5 = smov [#allocation10]  }
 0x2fb   :  { %v955_v29 = vpop.xlane.xlu1 %954  ;;  %s1857_s22 = sshll.u32 %s2311_s5, 4  ;;  %s1858_s22 = int_to_ptr.vmem [resolvable:$true] %s1857_s22 }
 0x2fc   :  { %2183 = vrcp.f32 %v955_v29  ;;  %2066 = vmatmul.mubr.msk.f32.vlgmr.msra.gmra.mxu0 %vm984_vm13, %v969_v28  ;;  %1834 = vst.msk [vmem:[#allocation10] sm:$0x1] %vm895_vm5, %v969_v28  ;;  %s2253_s23 = scalar_lea.vmem %s1858_s22, 128  ;;  %p2258_p2 = scmp.lt.s32.totalorder %s1858_s22, %s1858_s22 }
 0x2fd   :  { %v2178_v30 = vpop.eup %2177  ;;  %v964_v31 = vpop.xlane.xlu0 %963  ;;  %2069 = vmatpush3.msra.mxu0 %v2452_v33  ;;  %2072 = vmatprep.mubr.msk.f32.mxu0 %vm2309_vm0, %v2308_v0  ;;  %p2254_p1 = scmp.ne.s32.totalorder %s1858_s22, %s2253_s23  ;;  %p2259_p3 = scmp.lt.s32.totalorder %s2253_s23, %s2253_s23 }
 0x2fe   :  { %2185 = vrcp.f32 %v964_v31  ;;  %v973_v32 = vmul.f32 %v2178_v30, %v2162_v60  ;;  %2070 = vmatprep.subr.mxu0 %v2308_v0 }
 0x2ff   :  { %2071 = vmatpush3.msra.mxu0 %v2469_v37  ;;  %p2260_p4 = por %p2259_p3, %p2258_p2 }
 0x300   :  { %2080 = vmatmul.mubr.msk.f32.vlgmr.msra.gmra.mxu1 %vm984_vm13, %v973_v32  ;;  %1836 = vst.msk [vmem:[#allocation10 + $0x2] sm:$0x1] %vm895_vm5, %v973_v32  ;;  %2082 = vmatprep.subr.mxu0 %v2308_v0 }
 0x301   :  { %v2180_v34 = vpop.eup %2179  ;;  %2090 = vmatpush3.msra.mxu1 %v2458_v35  ;;  %2093 = vmatprep.mubr.msk.f32.mxu1 %vm2309_vm0, %v2308_v0  ;;  %p2261_p5 = pnand %p2260_p4, %p2254_p1 }
 0x302   :  { %v971_v33 = vmul.f32 %v2180_v34, %v2164_v5  ;;  %2091 = vmatprep.subr.mxu1 %v2308_v0 }
 0x303   :  { %v961_v36 = vpop.xlane.xlu1 %960  ;;  %2092 = vmatpush3.msra.mxu1 %v2479_v38 }
 0x304   :  { %2187 = vrcp.f32 %v961_v36  ;;  %2073 = vmatmul.mubr.msk.f32.vlgmr.msra.gmra.mxu0 %vm984_vm13, %v971_v33  ;;  %1835 = vst.msk [vmem:[#allocation10 + $0x1] sm:$0x1] %vm895_vm5, %v971_v33  ;;  %2103 = vmatprep.subr.mxu1 %v2308_v0 }
 0x305   :  { %v2182_v37 = vpop.eup %2181  ;;  %2083 = vmatpush3.msra.mxu0 %v2487_v39  ;;  %2086 = vmatprep.mubr.msk.f32.mxu0 %vm2309_vm0, %v2308_v0 }
 0x306   :  { %v977_v35 = vmul.f32 %v2182_v37, %v2166_v9  ;;  %2084 = vmatprep.subr.mxu0 %v2308_v0 }
 0x307   :  { %2085 = vmatpush3.msra.mxu0 %v2507_v43 }
 0x308   :  { %2094 = vmatmul.mubr.msk.f32.vlgmr.msra.gmra.mxu1 %vm984_vm13, %v977_v35  ;;  %1838 = vst.msk [vmem:[#allocation10 + $0x4] sm:$0x1] %vm895_vm5, %v977_v35  ;;  %2096 = vmatprep.subr.mxu0 %v2308_v0 }
 0x309   :  { %v2184_v38 = vpop.eup %2183  ;;  %2104 = vmatpush3.msra.mxu1 %v2496_v41  ;;  %2107 = vmatprep.mubr.msk.f32.mxu1 %vm2309_vm0, %v2308_v0 }
 0x30a   :  { %v975_v39 = vmul.f32 %v2184_v38, %v2589_v13  ;;  %2105 = vmatprep.subr.mxu1 %v2308_v0 }
 0x30b   :  { %v2186_v40 = vpop.eup %2185  ;;  %v967_v42 = vpop.xlane.xlu1 %966  ;;  %2106 = vmatpush3.msra.mxu1 %v2517_v44 }
 0x30c   :  { %2189 = vrcp.f32 %v967_v42  ;;  %2087 = vmatmul.mubr.msk.f32.vlgmr.msra.gmra.mxu0 %vm984_vm13, %v975_v39  ;;  %1837 = vst.msk [vmem:[#allocation10 + $0x3] sm:$0x1] %vm895_vm5, %v975_v39  ;;  %v981_v43 = vmul.f32 %v2186_v40, %v2593_v16  ;;  %2117 = vmatprep.subr.mxu1 %v2308_v0 }
 0x30d   :  { %2097 = vmatpush3.msra.mxu0 %v2525_v45  ;;  %2100 = vmatprep.mubr.msk.f32.mxu0 %vm2309_vm0, %v2308_v0 }
 0x30e   :  { %2108 = vmatmul.mubr.msk.f32.vlgmr.msra.gmra.mxu1 %vm984_vm13, %v981_v43  ;;  %1840 = vst.msk [vmem:[#allocation10 + $0x6] sm:$0x1] %vm895_vm5, %v981_v43  ;;  %2098 = vmatprep.subr.mxu0 %v2308_v0 }
 0x30f   :  { %2099 = vmatpush3.msra.mxu0 %v2540_v48  ;;  %2129 = vmatprep.mubr.msk.f32.mxu1 %vm2309_vm0, %v2308_v0 }
 0x310   :  { %2110 = vmatprep.subr.mxu0 %v2308_v0  ;;  %2118 = vmatpush3.xpose.msk.msra.mxu1 %vm246_vm2, %v1596_v46 }
 0x311   :  { %v2188_v41 = vpop.eup %2187  ;;  %2119 = vmatprep.subr.mxu1 %v2308_v0 }
 0x312   :  { %v979_v44 = vmul.f32 %v2188_v41, %v2597_v19 }
 0x314   :  { %2101 = vmatmul.mubr.msk.f32.vlgmr.msra.gmra.mxu0 %vm984_vm13, %v979_v44  ;;  %1839 = vst.msk [vmem:[#allocation10 + $0x5] sm:$0x1] %vm895_vm5, %v979_v44  ;;  %2120 = vmatpush3.xpose.msk.msra.mxu1 %vm246_vm2, %v1595_v47 }
 0x315   :  { %2111 = vmatpush3.msra.mxu0 %v2553_v49  ;;  %2114 = vmatprep.mubr.msk.f32.mxu0 %vm2309_vm0, %v2308_v0  ;;  %v1590_v49 = vld [vmem:[#allocation8 + $0x28] sm:$0xff] }
 0x316   :  { %2112 = vmatprep.subr.mxu0 %v2308_v0  ;;  %2121 = vmatprep.subr.mxu1 %v2308_v0 }
 0x317   :  { %2113 = vmatpush3.msra.mxu0 %v2565_v51  ;;  %v1589_v51 = vld [vmem:[#allocation8 + $0x20] sm:$0xff] }
 0x318   :  { %2132 = vmatprep.subr.mxu0 %v2308_v0  ;;  %2122 = vmatpush3.xpose.msk.msra.mxu1 %vm246_vm2, %v1594_v52 }
 0x319   :  { %v2190_v45 = vpop.eup %2189  ;;  %2123 = vmatprep.subr.mxu1 %v2308_v0 }
 0x31a   :  { %v983_v48 = vmul.f32 %v2190_v45, %v2601_v21 }
 0x31c   :  { %2115 = vmatmul.mubr.msk.f32.vlgmr.msra.gmra.mxu0 %vm984_vm13, %v983_v48  ;;  %1841 = vst.msk [vmem:[#allocation10 + $0x7] sm:$0x1] %vm895_vm5, %v983_v48  ;;  %2124 = vmatpush3.xpose.msk.msra.mxu1 %vm246_vm2, %v1593_v54 }
 0x31d   :  { %2144 = vmatprep.mubr.msk.f32.mxu0 %vm2309_vm0, %v2308_v0  ;;  %2133 = vmatpush3.xpose.msk.msra.mxu0 %vm97_vm1, %v1590_v49 }
 0x31e   :  { %2134 = vmatprep.subr.mxu0 %v2308_v0  ;;  %2125 = vmatprep.subr.mxu1 %v2308_v0 }
 0x320   :  { %2126 = vmatpush3.xpose.msk.msra.mxu1 %vm246_vm2, %v1592_v57 }
 0x321   :  { %2135 = vmatpush3.xpose.msk.msra.mxu0 %vm97_vm1, %v1589_v51  ;;  %2127 = vmatprep.subr.mxu1 %v2308_v0 }
 0x322   :  { %2136 = vmatprep.subr.mxu0 %v2308_v0 }
 0x324   :  { %2128 = vmatpush3.xpose.msk.msra.mxu1 %vm246_vm2, %v1591_v59 }
 0x325   :  { %2137 = vmatpush3.xpose.msk.msra.mxu0 %vm97_vm1, %v1588_v50 }
 0x326   :  { %2138 = vmatprep.subr.mxu0 %v2308_v0 }
 0x329   :  { %2139 = vmatpush3.xpose.msk.msra.mxu0 %vm97_vm1, %v1587_v53 }
 0x32a   :  { %2140 = vmatprep.subr.mxu0 %v2308_v0 }
 0x32d   :  { %2141 = vmatpush3.xpose.msk.msra.mxu0 %vm97_vm1, %v1586_v55 }
 0x32e   :  { %2142 = vmatprep.subr.mxu0 %v2308_v0 }
 0x331   :  { %2143 = vmatpush3.xpose.msk.msra.mxu0 %vm97_vm1, %v1585_v58 }
 0x334   :  { %2145 = vmatmul.mubr.msk.f32.vlgmr.msra.gmra.mxu0 %vm97_vm1, %v2393_v7 }
 0x3bc   :  { %v1054_v61 = vpop.f32.mrf.mxu0 }
 0x3bd   :  { %1569 = vst.msk [vmem:[#allocation2] sm:$0x1] %vm229_vm3, %v1054_v61 }
 0x3be   :  { %v2067_v62 = vpop.f32.mrf.mxu0 }
 0x3c0   :  { %v1200_v56 = vpop.f32.mrf.mxu1 }
 0x3c1   :  { %1571 = vst.msk [vmem:[#allocation2 + $0x2] sm:$0x1] %vm229_vm3, %v1200_v56 }
 0x3c2   :  { %v2081_v63 = vpop.f32.mrf.mxu1 }
 0x3c4   :  { %v1127_v0 = vpop.f32.mrf.mxu0  ;;  %v1577_v15 = vld [vmem:[#allocation2] sm:$0x1] }
 0x3c5   :  { %1570 = vst.msk [vmem:[#allocation2 + $0x1] sm:$0x1] %vm229_vm3, %v1127_v0 }
 0x3c6   :  { %v2074_v60 = vpop.f32.mrf.mxu0 }
 0x3c8   :  { %v1346_v1 = vpop.f32.mrf.mxu1  ;;  %v1579_v13 = vld [vmem:[#allocation2 + $0x2] sm:$0x1] }
 0x3c9   :  { %1573 = vst.msk [vmem:[#allocation2 + $0x4] sm:$0x1] %vm229_vm3, %v1346_v1 }
 0x3ca   :  { %v2095_v2 = vpop.f32.mrf.mxu1 }
 0x3cc   :  { %v1273_v3 = vpop.f32.mrf.mxu0  ;;  %v1578_v12 = vld [vmem:[#allocation2 + $0x1] sm:$0x1] }
 0x3cd   :  { %1572 = vst.msk [vmem:[#allocation2 + $0x3] sm:$0x1] %vm229_vm3, %v1273_v3  ;;  %v1605_v18 = vcombine.low %v1577_v15, %v1578_v12 }
 0x3ce   :  { %v2088_v7 = vpop.f32.mrf.mxu0  ;;  %v1492_v4 = vpop.f32.mrf.mxu1 }
 0x3cf   :  { %1575 = vst.msk [vmem:[#allocation2 + $0x6] sm:$0x1] %vm229_vm3, %v1492_v4  ;;  %v1615_v25 = vrot.slane %v1605_v18, %v2433_v17 }
 0x3d0   :  { %v2109_v5 = vpop.f32.mrf.mxu1  ;;  %v1581_v19 = vld [vmem:[#allocation2 + $0x4] sm:$0x1] }
 0x3d4   :  { %v1419_v6 = vpop.f32.mrf.mxu0  ;;  %v1580_v10 = vld [vmem:[#allocation2 + $0x3] sm:$0x1] }
 0x3d5   :  { %1574 = vst.msk [vmem:[#allocation2 + $0x5] sm:$0x1] %vm229_vm3, %v1419_v6  ;;  %v1606_v14 = vcombine.low %v1579_v13, %v1580_v10 }
 0x3d6   :  { %v2102_v8 = vpop.f32.mrf.mxu0  ;;  %v1583_v22 = vld [vmem:[#allocation2 + $0x6] sm:$0x1] }
 0x3d7   :  { %v1622_v21 = vrot.slane %v1606_v14, %v2433_v17 }
 0x3d9   :  { %v1637_v28 = vcombine.low %v1615_v25, %v1622_v21 }
 0x3db   :  { %v1645_v30 = vrot.slane %v1637_v28, %v2433_v17 }
 0x3dc   :  { %v1565_v9 = vpop.f32.mrf.mxu0  ;;  %v1582_v16 = vld [vmem:[#allocation2 + $0x5] sm:$0x1] }
 0x3dd   :  { %1576 = vst.msk [vmem:[#allocation2 + $0x7] sm:$0x1] %vm229_vm3, %v1565_v9  ;;  %v1607_v20 = vcombine.low %v1581_v19, %v1582_v16 }
 0x3de   :  { %v2116_v11 = vpop.f32.mrf.mxu0 }
 0x3df   :  { %v1629_v26 = vrot.slane %v1607_v20, %v2433_v17 }
 0x3e4   :  { %v1584_v23 = vld [vmem:[#allocation2 + $0x7] sm:$0x1] }
 0x3e5   :  { %v1608_v24 = vcombine.low %v1583_v22, %v1584_v23 }
 0x3e7   :  { %v1636_v27 = vrot.slane %v1608_v24, %v2433_v17 }
 0x3e9   :  { %v1638_v29 = vcombine.low %v1629_v26, %v1636_v27 }
 0x3eb   :  { %v1652_v31 = vrot.slane %v1638_v29, %v2433_v17 }
 0x3ed   :  { %v1653_v32 = vcombine.low %v1645_v30, %v1652_v31 }
 0x3ef   :  { %2130 = vmatmul.mubr.msk.f32.vlgmr.msra.gmra.mxu1 %vm246_vm2, %v1653_v32 }
 0x3f4   :  { %v1828_v34 = vpop.f32.mrf.mxu0 }
 0x3f6   :  { %v2146_v33 = vpop.f32.mrf.mxu0 }
 0x3f7   :  { %2264 = shalt.err (!%p2261_p5)
}
 0x3f8   :  { %1863 = dma.vmem_to_hbm [thread:$0]  %s1858_s22, 128, %s2739_s7, [#allocation11], %s2302_s27, %s2302_s27, %s2303_s28  }
 0x3f9   :  { %s2312_s26 = smov [#allocation9]  }
 0x3fa   :  { %s1848_s29 = sshll.u32 %s2312_s26, 4  ;;  %s1849_s29 = int_to_ptr.vmem [resolvable:$true] %s1848_s29 }
 0x3fb   :  { %s2273_s30 = scalar_lea.vmem %s1849_s29, 128  ;;  %p2278_p7 = scmp.lt.s32.totalorder %s1849_s29, %s1849_s29 }
 0x3fc   :  { %p2274_p6 = scmp.ne.s32.totalorder %s1849_s29, %s2273_s30  ;;  %p2279_p8 = scmp.lt.s32.totalorder %s2273_s30, %s2273_s30 }
 0x3fe   :  { %p2280_p9 = por %p2279_p8, %p2278_p7 }
 0x400   :  { %p2281_p10 = pnand %p2280_p9, %p2274_p6 }
 0x4af   :  { %v1740_v17 = vpop.f32.mrf.mxu1 }
 0x4b0   :  { %v1829_v36 = vadd.f32 %v1828_v34, %v1740_v17 }
 0x4b1   :  { %v2131_v37 = vpop.f32.mrf.mxu1 }
 0x4b2   :  { %2191 = vtanh.f32 %v1829_v36 }
 0x4bf   :  { %v2192_v35 = vpop.eup %2191 }
 0x4c0   :  { %1833 = vst.msk [vmem:[#allocation9] sm:$0xff] %vm97_vm1, %v2192_v35 }
 0x4c1   :  { %2284 = shalt.err (!%p2281_p10)
}
 0x4c2   :  { %1851 = dma.vmem_to_hbm [thread:$0]  %s1849_s29, 128, %s2738_s6, [#allocation5]  }
 0x4c3   :  { %2297 = dma.done.wait [#allocation5], 128  }
 0x4c4   :  { %2298 = vsyncadd [#allocation5], 4294967168 }
 0x4c5   :  { %2299 = dma.done.wait [#allocation11], 128  }
 0x4c6   :  { %2300 = vsyncadd [#allocation11], 4294967168 }
 0x4c7   :  { %1870 = vsyncpa [#allocation4], 1 }
 0x4c8   :  { %1871 = vsyncpa [#allocation7], 1 }
 0x4c9   :  { %1872 = vsyncpa [#allocation5], 1 }
 0x4ca   :  { %1873 = vsyncpa [#allocation11], 1 }

</bundles_post_ra>
